<compile_context>
chip_gen: v5e
topology: v5e:2x2
jax: 0.10.0
libtpu: 0.0.40
codegen_flags: <defaults>
</compile_context>

<pallas_src>
import math

import jax
import jax.numpy as jnp
import numpy as np
from jax.experimental import pallas as pl
from jax.experimental.pallas import tpu as pltpu


# ----------------------------- kernel ---------------------------------------


def _kde_logpdf_kernel(qt_ref, x_ref, xb_ref, o_ref):
    """One block of TB query points against the whole (VMEM-resident) dataset.

    qt_ref : (D, TB)  whitened queries, transposed (lane axis = batch)
    x_ref  : (N, D)   whitened dataset (full array, resident)
    xb_ref : (N, 1)   per-point bias: -0.5*||x_i||^2 + log_norm
    o_ref  : (1, 1, TB) log-density for this block (lane-dense store)
    """
    qt = qt_ref[...]                                             # (D, TB)
    x = x_ref[...]                                               # (N, D)

    # energies e[i, j] = x_i . q_j - 0.5*||x_i||^2 + log_norm
    e = jnp.dot(x, qt, preferred_element_type=jnp.float32) + xb_ref[...]  # (N, TB)

    # logsumexp over the data axis (sublanes) -> lane-oriented (1, TB) result.
    m = jnp.max(e, axis=0, keepdims=True)                        # (1, TB)
    lse = jnp.log(jnp.sum(jnp.exp(e - m), axis=0, keepdims=True)) + m

    qsq = jnp.sum(qt * qt, axis=0, keepdims=True)                # (1, TB)
    o_ref[...] = (lse - 0.5 * qsq)[None]                         # (1, 1, TB)


# --------------------------- glue / wrapper ----------------------------------


def _round_up(x, m):
    return ((x + m - 1) // m) * m


def kernel_density_forward(buffer_s, s, *, block_q=128):
    """Pallas implementation of KernelDensity.forward.

    buffer_s : (N, D) float32 buffered states (the KDE dataset).
    s        : (B, D) float32 query states (trailing dims are flattened).
    Returns  : (B, 1) float32 log probabilities (matches torch forward).
    """
    data = jnp.asarray(buffer_s, jnp.float32)
    q = jnp.asarray(s, jnp.float32)
    q = q.reshape(q.shape[0], -1)
    N, D = data.shape
    B = q.shape[0]
    hi = jax.lax.Precision.HIGHEST

    # ---- KDE fit (scipy.stats.gaussian_kde, bw_method='scott') -------------
    factor = float(N) ** (-1.0 / (D + 4))                        # Scott's rule
    mean = jnp.mean(data, axis=0, keepdims=True)
    xc = data - mean
    cov = jnp.dot(xc.T, xc, precision=hi) / (N - 1) * (factor ** 2)  # (D, D)
    L = jnp.linalg.cholesky(cov)                                 # lower
    Linv = jnp.linalg.inv(L)

    # Whiten so that mahalanobis^2(a, b) == ||w(a) - w(b)||^2.
    xw = jnp.dot(data, Linv.T, precision=hi)                     # (N, D)
    qw = jnp.dot(q, Linv.T, precision=hi)                        # (B, D)

    # log of the per-kernel normalizer and uniform weight 1/N.
    log_norm = (-math.log(N)
                - 0.5 * D * math.log(2.0 * math.pi)
                - jnp.sum(jnp.log(jnp.diag(L))))
    # Fold the constant into the per-data-point bias (constant shift of the LSE).
    xb = -0.5 * jnp.sum(xw * xw, axis=-1, keepdims=True) + log_norm  # (N, 1)

    # ---- pad shapes for clean TPU tiling ------------------------------------
    Dp = _round_up(D, 8)
    if Dp != D:  # zero feature-padding: contributes nothing to dots/norms
        xw = jnp.pad(xw, ((0, 0), (0, Dp - D)))
        qw = jnp.pad(qw, ((0, 0), (0, Dp - D)))

    TB = block_q                               # >=128 -> lane-dense output stores
    G = pl.cdiv(B, TB)
    B_pad = G * TB
    qt = jnp.zeros((Dp, B_pad), jnp.float32).at[:, :B].set(qw.T)  # (Dp, B_pad)

    # TODO(synk): for very large buffers (whitened dataset >> ~16 MiB, v7x VMEM
    # cap) this would need a blocked-N streaming logsumexp; realistic visitation
    # buffers fit VMEM comfortably so the dataset is kept fully resident.
    out = pl.pallas_call(
        _kde_logpdf_kernel,
        out_shape=jax.ShapeDtypeStruct((1, 1, B_pad), jnp.float32),
        grid_spec=pltpu.PrefetchScalarGridSpec(
            num_scalar_prefetch=0,
            grid=(G,),
            in_specs=[
                pl.BlockSpec((Dp, TB), lambda i: (0, i)),   # query block
                pl.BlockSpec((N, Dp), lambda i: (0, 0)),    # whole dataset, resident
                pl.BlockSpec((N, 1), lambda i: (0, 0)),     # per-point bias, resident
            ],
            out_specs=pl.BlockSpec((1, 1, TB), lambda i: (0, 0, i)),
        ),
        compiler_params=pltpu.CompilerParams(
            dimension_semantics=("parallel",),
        ),
    )(qt, xw, xb)

    return out.reshape(-1)[:B].reshape(B, 1)


# ------------------------------ reference ------------------------------------


def _reference_logpdf(data, queries):
    """Plain numpy float64 gaussian_kde.logpdf (Scott bandwidth, uniform weights)."""
    data = np.asarray(data, np.float64)
    queries = np.asarray(queries, np.float64)
    N, D = data.shape
    factor = N ** (-1.0 / (D + 4))
    cov = np.atleast_2d(np.cov(data, rowvar=False)) * factor ** 2
    cov_inv = np.linalg.inv(cov)
    diff = queries[:, None, :] - data[None, :, :]                # (B, N, D)
    maha = np.einsum("bnd,de,bne->bn", diff, cov_inv, diff)
    e = -0.5 * maha
    m = e.max(axis=1, keepdims=True)
    lse = np.log(np.exp(e - m).sum(axis=1)) + m[:, 0]
    log_norm = (-np.log(N) - 0.5 * D * np.log(2.0 * np.pi)
                - 0.5 * np.linalg.slogdet(cov)[1])
    return lse + log_norm                                        # (B,)


# -------------------------------- main ---------------------------------------

if __name__ == "__main__":
    key = jax.random.PRNGKey(0)
    k_a, k_d, k_q = jax.random.split(key, 3)

    D = 4    # continuous state dimension
    N = 64   # states in the visitation buffer
    B = 10   # query batch (also exercises batch padding)

    # Synthetic buffer with a non-trivial covariance, and queries from the
    # same-ish distribution.
    A = jax.random.normal(k_a, (D, D), dtype=jnp.float32) * 0.5 + jnp.eye(D, dtype=jnp.float32)
    buffer_s = jax.random.normal(k_d, (N, D), dtype=jnp.float32) @ A
    s = jax.random.normal(k_q, (B, D), dtype=jnp.float32) @ A

    logp = kernel_density_forward(buffer_s, s)
    jax.block_until_ready(logp)

    ref = _reference_logpdf(np.asarray(buffer_s), np.asarray(s))

    assert logp.shape == (B, 1)
    np.testing.assert_allclose(np.asarray(logp)[:, 0], ref, rtol=2e-3, atol=2e-3)

    print("KERNEL_OK")
</pallas_src>

<mosaic_0001>
module attributes {stable_mosaic.version = 11 : i64} {
  func.func @_kde_logpdf_kernel(%arg0: i32, %arg1: memref<8x128xf32, #tpu.memory_space<vmem>>, %arg2: memref<64x8xf32, #tpu.memory_space<vmem>>, %arg3: memref<64x1xf32, #tpu.memory_space<vmem>>, %arg4: memref<1x1x128xf32, #tpu.memory_space<vmem>>) attributes {dimension_semantics = [#tpu.dimension_semantics<parallel>], iteration_bounds = array<i64: 1>, scalar_prefetch = 0 : i64, scratch_operands = 0 : i64, tpu.core_type = #tpu.core_type<tc>, window_params = [{transform_indices = @transform_0, window_bounds = array<i64: 8, 128>}, {pipeline_mode = #tpu.pipeline_mode<synchronous>, transform_indices = @transform_1, window_bounds = array<i64: 64, 8>}, {pipeline_mode = #tpu.pipeline_mode<synchronous>, transform_indices = @transform_2, window_bounds = array<i64: 64, 1>}, {transform_indices = @transform_3, window_bounds = array<i64: 1, 1, 128>}]} {
    %c0 = arith.constant 0 : index
    %c0_0 = arith.constant 0 : index
    %0 = vector.load %arg1[%c0, %c0_0] : memref<8x128xf32, #tpu.memory_space<vmem>>, vector<8x128xf32>
    %c0_1 = arith.constant 0 : index
    %c0_2 = arith.constant 0 : index
    %1 = vector.load %arg2[%c0_1, %c0_2] : memref<64x8xf32, #tpu.memory_space<vmem>>, vector<64x8xf32>
    %cst = arith.constant dense<0.000000e+00> : vector<64x128xf32>
    %2 = tpu.matmul %1, %0, %cst {dimension_numbers = #tpu.dot_dimension_numbers<[1], [0], [0], [1], [0, 0, 1, 1], [], []>} : vector<64x8xf32>, vector<8x128xf32>, vector<64x128xf32> -> vector<64x128xf32>
    %c0_3 = arith.constant 0 : index
    %c0_4 = arith.constant 0 : index
    %3 = vector.load %arg3[%c0_3, %c0_4] : memref<64x1xf32, #tpu.memory_space<vmem>>, vector<64x1xf32>
    %4 = vector.broadcast %3 : vector<64x1xf32> to vector<64x128xf32>
    %5 = arith.addf %2, %4 : vector<64x128xf32>
    %cst_5 = arith.constant dense<0xFF800000> : vector<128xf32>
    %6 = vector.multi_reduction <maximumf>, %5, %cst_5 [0] : vector<64x128xf32> to vector<128xf32>
    %7 = vector.shape_cast %6 : vector<128xf32> to vector<1x128xf32>
    %8 = vector.broadcast %7 : vector<1x128xf32> to vector<64x128xf32>
    %9 = arith.subf %5, %8 : vector<64x128xf32>
    %10 = math.exp %9 : vector<64x128xf32>
    %cst_6 = arith.constant dense<0.000000e+00> : vector<128xf32>
    %11 = vector.multi_reduction <add>, %10, %cst_6 [0] : vector<64x128xf32> to vector<128xf32>
    %12 = vector.shape_cast %11 : vector<128xf32> to vector<1x128xf32>
    %13 = math.log %12 : vector<1x128xf32>
    %14 = arith.addf %13, %7 : vector<1x128xf32>
    %15 = arith.mulf %0, %0 : vector<8x128xf32>
    %cst_7 = arith.constant dense<0.000000e+00> : vector<128xf32>
    %16 = vector.multi_reduction <add>, %15, %cst_7 [0] : vector<8x128xf32> to vector<128xf32>
    %17 = vector.shape_cast %16 : vector<128xf32> to vector<1x128xf32>
    %cst_8 = arith.constant 5.000000e-01 : f32
    %18 = vector.broadcast %cst_8 : f32 to vector<1x128xf32>
    %19 = arith.mulf %18, %17 : vector<1x128xf32>
    %20 = arith.subf %14, %19 : vector<1x128xf32>
    %21 = vector.shape_cast %20 : vector<1x128xf32> to vector<1x1x128xf32>
    %c0_9 = arith.constant 0 : index
    %c0_10 = arith.constant 0 : index
    %c0_11 = arith.constant 0 : index
    %22 = vector.load %arg4[%c0_9, %c0_10, %c0_11] : memref<1x1x128xf32, #tpu.memory_space<vmem>>, vector<1x1x128xf32>
    tpu.vector_store %arg4[%c0_9, %c0_10, %c0_11], %21 {strides = array<i32>} : memref<1x1x128xf32, #tpu.memory_space<vmem>>, vector<1x1x128xf32>,
    return
  }
  func.func @transform_0(%arg0: i32) -> (i32, i32) {
    %c0_i32 = arith.constant 0 : i32
    %c0_i32_0 = arith.constant 0 : i32
    return %c0_i32, %arg0 : i32, i32
  }
  func.func @transform_1(%arg0: i32) -> (i32, i32) {
    %c0_i32 = arith.constant 0 : i32
    %c0_i32_0 = arith.constant 0 : i32
    %c0_i32_1 = arith.constant 0 : i32
    return %c0_i32, %c0_i32_0 : i32, i32
  }
  func.func @transform_2(%arg0: i32) -> (i32, i32) {
    %c0_i32 = arith.constant 0 : i32
    %c0_i32_0 = arith.constant 0 : i32
    %c0_i32_1 = arith.constant 0 : i32
    return %c0_i32, %c0_i32_0 : i32, i32
  }
  func.func @transform_3(%arg0: i32) -> (i32, i32, i32) {
    %c0_i32 = arith.constant 0 : i32
    %c0_i32_0 = arith.constant 0 : i32
    %c0_i32_1 = arith.constant 0 : i32
    return %c0_i32, %c0_i32_0, %arg0 : i32, i32, i32
  }
}

</mosaic_0001>

<bundles_post_ra>
// kernel: tpu_custom_call.1
= control target key start
LH: loop header
LB: loop body
LE: loop exit
PB: predicated region body
PF: predicated region fallthrough
CT: control target
= control target key end

     0   :  { %v277_v1 = vmov 0   ;;  %vm72_vm0 = vcmask 64512   ;;  %s369_s0 = inlined_call_operand.vmem [shape: f32[8,128], index: 0, kind: input, shape index: {}]   ;;  %s370_s1 = inlined_call_operand.vmem [shape: f32[64,8], index: 1, kind: input, shape index: {}]   ;;  %s371_s2 = inlined_call_operand.vmem [shape: f32[64,1], index: 2, kind: input, shape index: {}]   ;;  %s372_s3 = inlined_call_operand.hbm [shape: f32[1,1,128], index: 3, kind: output, shape index: {}]  }
   0x1   :  { %v302_v0 = vld [vmem:[%s369_s0] sm:$0xff]  ;;  %231 = vset.pattern.permute.xlu1 %v277_v1  ;;  %230 = vset.pattern.permute.xlu0 %v277_v1  ;;  %v26_v2 = vld [vmem:[%s371_s2 + $0x10] sm:$0xff] }
   0x2   :  { %v24_v3 = vld [vmem:[%s371_s2] sm:$0xff]  ;;  %112 = vmatpush.msra.mxu0 %v302_v0  ;;  %225 = vmatpush.msra.mxu1 %v302_v0  ;;  %v18_v5 = vld [vmem:[%s370_s1 + $0x10] sm:$0xff] }
   0x3   :  { %v16_v4 = vld [vmem:[%s370_s1] sm:$0xff]  ;;  %226 = vmatpush.msra.mxu2 %v302_v0  ;;  %227 = vmatpush.msra.mxu3 %v302_v0  ;;  %v22_v7 = vld [vmem:[%s370_s1 + $0x30] sm:$0xff] }
   0x4   :  { %v20_v6 = vld [vmem:[%s370_s1 + $0x20] sm:$0xff]  ;;  %44 = vperm.xlu1 %231, %v26_v2   ;;  %34 = vperm.xlu0 %230, %v24_v3  }
   0x5   :  { %217 = vmatmul.msk.f32.vlgmr.msra.gmra.mxu0 %vm72_vm0, %v16_v4  ;;  %219 = vmatmul.msk.f32.vlgmr.msra.gmra.mxu1 %vm72_vm0, %v18_v5  ;;  %v28_v8 = vld [vmem:[%s371_s2 + $0x20] sm:$0xff] }
   0x6   :  { %8 = vsyncpa [#allocation3], 0  ;;  %221 = vmatmul.msk.f32.vlgmr.msra.gmra.mxu2 %vm72_vm0, %v20_v6  ;;  %223 = vmatmul.msk.f32.vlgmr.msra.gmra.mxu3 %vm72_vm0, %v22_v7  ;;  %v27_v9 = vld [vmem:[%s371_s2 + $0x18] sm:$0xff]  ;;  %v25_v10 = vld [vmem:[%s371_s2 + $0x8] sm:$0xff]  ;;  %s208_s0 = sshll.u32 %s372_s3, 4  ;;  %s209_s0 = int_to_ptr.hbm [resolvable:$true] %s208_s0 }
   0x7   :  { %232 = vset.pattern.permute.xlu2 %v277_v1  ;;  %v17_v11 = vld [vmem:[%s370_s1 + $0x8] sm:$0xff]  ;;  %v19_v12 = vld [vmem:[%s370_s1 + $0x18] sm:$0xff]  ;;  %v30_v17 = vld [vmem:[%s371_s2 + $0x30] sm:$0xff] }
   0x8   :  { %54 = vperm.xlu2 %232, %v28_v8   ;;  %v21_v13 = vld [vmem:[%s370_s1 + $0x28] sm:$0xff]  ;;  %v23_v14 = vld [vmem:[%s370_s1 + $0x38] sm:$0xff] }
   0x9   :  { %v29_v15 = vld [vmem:[%s371_s2 + $0x28] sm:$0xff]  ;;  %v31_v16 = vld [vmem:[%s371_s2 + $0x38] sm:$0xff]  ;;  %s278_s2 = smov [#allocation2]  }
   0xa   :  { %s206_s17 = sshll.u32 %s278_s2, 4  ;;  %s207_s17 = int_to_ptr.vmem [resolvable:$true] %s206_s17 }
   0xc   :  { %49 = vperm.xlu1 %231, %v27_v9   ;;  %39 = vperm.xlu0 %230, %v25_v10  }
   0xd   :  { %218 = vmatmul.msk.f32.gmra.mxu0 %vm72_vm0, %v17_v11  ;;  %220 = vmatmul.msk.f32.gmra.mxu1 %vm72_vm0, %v19_v12 }
   0xe   :  { %222 = vmatmul.msk.f32.gmra.mxu2 %vm72_vm0, %v21_v13  ;;  %224 = vmatmul.msk.f32.gmra.mxu3 %vm72_vm0, %v23_v14 }
  0x10   :  { %59 = vperm.xlu2 %232, %v29_v15  }
  0x14   :  { %69 = vperm.xlu1 %231, %v31_v16   ;;  %64 = vperm.xlu0 %230, %v30_v17   ;;  %v191_v16 = vmul.f32 %v302_v0, %v302_v0 }
  0x62   :  { %v55_v24 = vpop.permute.xlu2 %54 }
  0x6a   :  { %v60_v31 = vpop.permute.xlu2 %59 }
  0x76   :  { %v35_v18 = vpop.permute.xlu0 %34  ;;  %v45_v19 = vpop.permute.xlu1 %44 }
  0x7e   :  { %v40_v20 = vpop.permute.xlu0 %39  ;;  %v50_v23 = vpop.permute.xlu1 %49 }
  0x82   :  { %v114_v21 = vpop.f32.mrf.mxu0  ;;  %v120_v22 = vpop.f32.mrf.mxu1 }
  0x83   :  { %v115_v34 = vadd.f32 %v114_v21, %v35_v18  ;;  %v121_v35 = vadd.f32 %v120_v22, %v45_v19  ;;  %v192_v21 = vrot.slane %v191_v16, 4 }
  0x86   :  { %v65_v27 = vpop.permute.xlu0 %64  ;;  %v70_v30 = vpop.permute.xlu1 %69 }
  0x89   :  { %v126_v25 = vpop.f32.mrf.mxu2  ;;  %v132_v26 = vpop.f32.mrf.mxu3 }
  0x8a   :  { %v117_v28 = vpop.f32.mrf.mxu0  ;;  %v123_v29 = vpop.f32.mrf.mxu1  ;;  %v127_v32 = vadd.f32 %v126_v25, %v55_v24  ;;  %v133_v33 = vadd.f32 %v132_v26, %v65_v27  ;;  %v193_v25 = vadd.f32 %v192_v21, %v191_v16 }
  0x8b   :  { %v118_v38 = vadd.f32 %v117_v28, %v40_v20  ;;  %v124_v39 = vadd.f32 %v123_v29, %v50_v23 }
  0x8c   :  { %v138_v42 = vmax.f32 %v115_v34, %v127_v32  ;;  %v140_v43 = vmax.f32 %v121_v35, %v133_v33  ;;  %v194_v28 = vrot.slane %v193_v25, 2 }
  0x91   :  { %v129_v36 = vpop.f32.mrf.mxu2  ;;  %v135_v37 = vpop.f32.mrf.mxu3 }
  0x92   :  { %v130_v40 = vadd.f32 %v129_v36, %v60_v31  ;;  %v136_v41 = vadd.f32 %v135_v37, %v70_v30  ;;  %v195_v31 = vadd.f32 %v194_v28, %v193_v25 }
  0x94   :  { %v139_v44 = vmax.f32 %v118_v38, %v130_v40  ;;  %v141_v45 = vmax.f32 %v124_v39, %v136_v41 }
  0x96   :  { %v142_v46 = vmax.f32 %v138_v42, %v139_v44  ;;  %v143_v47 = vmax.f32 %v140_v43, %v141_v45 }
  0x98   :  { %v144_v48 = vmax.f32 %v142_v46, %v143_v47 }
  0x9a   :  { %v145_v49 = vrot.slane %v144_v48, 4 }
  0x9c   :  { %v146_v50 = vmax.f32 %v144_v48, %v145_v49 }
  0x9e   :  { %v147_v51 = vrot.slane %v146_v50, 2 }
  0xa0   :  { %v148_v52 = vmax.f32 %v146_v50, %v147_v51 }
  0xa2   :  { %v149_v53 = vrot.slane %v148_v52, 1 }
  0xa4   :  { %v150_v54 = vmax.f32 %v148_v52, %v149_v53 }
  0xa6   :  { %v151_v55 = vsub.f32 %v115_v34, %v150_v54  ;;  %v152_v56 = vsub.f32 %v118_v38, %v150_v54  ;;  %v153_v57 = vsub.f32 %v121_v35, %v150_v54  ;;  %v154_v58 = vsub.f32 %v124_v39, %v150_v54 }
  0xa7   :  { %v155_v61 = vsub.f32 %v127_v32, %v150_v54  ;;  %v156_v63 = vsub.f32 %v130_v40, %v150_v54  ;;  %v157_v2 = vsub.f32 %v133_v33, %v150_v54  ;;  %v158_v4 = vsub.f32 %v136_v41, %v150_v54 }
  0xa8   :  { %v159_v59 = vmul.f32 1.442695, %v151_v55  ;;  %v161_v60 = vmul.f32 1.442695, %v152_v56  ;;  %v163_v62 = vmul.f32 1.442695, %v153_v57 }
  0xa9   :  { %v165_v1 = vmul.f32 1.442695, %v154_v58  ;;  %v167_v3 = vmul.f32 1.442695, %v155_v61  ;;  %v169_v5 = vmul.f32 1.442695, %v156_v63 }
  0xaa   :  { %233 = vpow2.f32 %v159_v59  ;;  %v171_v8 = vmul.f32 1.442695, %v157_v2  ;;  %v173_v11 = vmul.f32 1.442695, %v158_v4  ;;  %v196_v34 = vrot.slane %v195_v31, 1 }
  0xab   :  { %235 = vpow2.f32 %v161_v60 }
  0xac   :  { %237 = vpow2.f32 %v163_v62  ;;  %v197_v0 = vadd.f32 %v196_v34, %v195_v31 }
  0xad   :  { %239 = vpow2.f32 %v165_v1 }
  0xae   :  { %241 = vpow2.f32 %v167_v3  ;;  %v198_v37 = vmul.f32 0.5, %v197_v0 }
  0xaf   :  { %243 = vpow2.f32 %v169_v5 }
  0xb0   :  { %v234_v6 = vpop.eup %233  ;;  %245 = vpow2.f32 %v171_v8 }
  0xb1   :  { %v236_v7 = vpop.eup %235  ;;  %247 = vpow2.f32 %v173_v11 }
  0xb2   :  { %v175_v9 = vadd.f32 %v236_v7, %v234_v6  ;;  %v238_v10 = vpop.eup %237 }
  0xb3   :  { %v240_v13 = vpop.eup %239 }
  0xb4   :  { %v176_v12 = vadd.f32 %v238_v10, %v175_v9  ;;  %v242_v15 = vpop.eup %241 }
  0xb5   :  { %v244_v18 = vpop.eup %243 }
  0xb6   :  { %v177_v14 = vadd.f32 %v240_v13, %v176_v12  ;;  %v246_v20 = vpop.eup %245 }
  0xb7   :  { %v248_v23 = vpop.eup %247 }
  0xb8   :  { %v178_v17 = vadd.f32 %v242_v15, %v177_v14 }
  0xba   :  { %v179_v19 = vadd.f32 %v244_v18, %v178_v17 }
  0xbc   :  { %v180_v22 = vadd.f32 %v246_v20, %v179_v19 }
  0xbe   :  { %v181_v24 = vadd.f32 %v248_v23, %v180_v22 }
  0xc0   :  { %v182_v26 = vrot.slane %v181_v24, 4 }
  0xc2   :  { %v183_v27 = vadd.f32 %v182_v26, %v181_v24 }
  0xc4   :  { %v184_v29 = vrot.slane %v183_v27, 2 }
  0xc6   :  { %v185_v30 = vadd.f32 %v184_v29, %v183_v27 }
  0xc8   :  { %v186_v32 = vrot.slane %v185_v30, 1 }
  0xca   :  { %v187_v33 = vadd.f32 %v186_v32, %v185_v30 }
  0xcc   :  { %249 = vlog2.f32 %v187_v33 }
  0xd2   :  { %v250_v35 = vpop.eup %249 }
  0xd3   :  { %v189_v36 = vmul.f32 0.6931472, %v250_v35 }
  0xd5   :  { %v190_v38 = vadd.f32 %v189_v36, %v150_v54 }
  0xd7   :  { %v199_v39 = vsub.f32 %v190_v38, %v198_v37 }
  0xd9   :  { %200 = vst [vmem:[#allocation2] sm:$0x1] %v199_v39 }
  0xda   :  { %211 = dma.vmem_to_hbm [thread:$0]  %s207_s17, 16, %s209_s0, [#allocation3]  }
  0xdb   :  { %275 = dma.done.wait [#allocation3], 16  }
  0xdc   :  { %276 = vsyncadd [#allocation3], 4294967280 }
  0xdd   :  { %216 = vsyncpa [#allocation3], 1 }

</bundles_post_ra>
